<compile_context>
chip_gen: v5e
topology: v5e:2x2
jax: 0.10.0
libtpu: 0.0.40
codegen_flags: <defaults>
</compile_context>

<pallas_src>
import functools
import math

import jax
import jax.numpy as jnp
from jax.experimental import pallas as pl
from jax.experimental.pallas import tpu as pltpu


# ----------------------------- in-kernel helpers -----------------------------

def _gelu_tanh(x):
    # tanh-based GELU (EUP transcendental); |diff| vs exact erf GELU <~3e-4.
    c = 0.7978845608028654  # sqrt(2/pi)
    return 0.5 * x * (1.0 + jnp.tanh(c * (x + 0.044715 * x * x * x)))


def _layer_norm(x, gamma, beta, eps=1e-5):
    mean = jnp.mean(x, axis=-1, keepdims=True)
    var = jnp.mean((x - mean) ** 2, axis=-1, keepdims=True)  # biased, like PyTorch LN
    return (x - mean) * jax.lax.rsqrt(var + eps) * gamma + beta


# --------------------------------- kernel ------------------------------------

def encoder_layer_kernel(x_ref, mask_ref,
                         ln1g_ref, ln1b_ref,
                         wq_ref, bq_ref, wk_ref, bk_ref, wv_ref, bv_ref,
                         wo_ref, bo_ref,
                         ln2g_ref, ln2b_ref,
                         w1_ref, b1_ref, w2_ref, b2_ref,
                         out_ref,
                         *, n_heads, d_k, d_v):
    x = x_ref[...]              # (M, D) f32, M = B*S (batch folded)
    add_mask = mask_ref[...]    # (M, M) f32 additive mask (-1e9 where masked / cross-batch)

    # ---- LayerNorm 1 (f32) ----
    xn = _layer_norm(x, ln1g_ref[...], ln1b_ref[...])        # (M, D); also the residual
    xn_bf = xn.astype(jnp.bfloat16)

    # ---- QKV projections: bf16 operands, f32 accumulation on the MXU ----
    q_all = jnp.dot(xn_bf, wq_ref[...], preferred_element_type=jnp.float32) + bq_ref[...]
    k_all = jnp.dot(xn_bf, wk_ref[...], preferred_element_type=jnp.float32) + bk_ref[...]
    v_all = jnp.dot(xn_bf, wv_ref[...], preferred_element_type=jnp.float32) + bv_ref[...]
    q_bf = q_all.astype(jnp.bfloat16)
    k_bf = k_all.astype(jnp.bfloat16)
    v_bf = v_all.astype(jnp.bfloat16)

    inv_sqrt_dk = 1.0 / math.sqrt(d_k)
    trans_rhs_dims = (((1,), (1,)), ((), ()))                # contract last dims: Q @ K^T

    # ---- per-head scaled-dot-product attention ----
    ctx_heads = []
    for h in range(n_heads):
        q_h = q_bf[:, h * d_k:(h + 1) * d_k]                 # (M, d_k)
        k_h = k_bf[:, h * d_k:(h + 1) * d_k]                 # (M, d_k)
        v_h = v_bf[:, h * d_v:(h + 1) * d_v]                 # (M, d_v)

        scores = jax.lax.dot_general(q_h, k_h, trans_rhs_dims,
                                     preferred_element_type=jnp.float32)
        scores = scores * inv_sqrt_dk + add_mask             # == masked_fill(mask, -1e9)

        m = jnp.max(scores, axis=-1, keepdims=True)          # f32 softmax stats
        e = jnp.exp(scores - m)
        denom = jnp.sum(e, axis=-1, keepdims=True)
        attn = e * pl.reciprocal(denom, approx=True)         # divide on the EUP

        ctx_heads.append(jnp.dot(attn.astype(jnp.bfloat16), v_h,
                                 preferred_element_type=jnp.float32))   # (M, d_v)

    ctx = jnp.concatenate(ctx_heads, axis=-1)                # (M, n_heads*d_v)

    # ---- single fused output projection + bias + residual ----
    attn_out = jnp.dot(ctx.astype(jnp.bfloat16), wo_ref[...],
                       preferred_element_type=jnp.float32) + bo_ref[...] + xn

    # ---- LayerNorm 2 (f32) ----
    y = _layer_norm(attn_out, ln2g_ref[...], ln2b_ref[...])

    # ---- Position-wise FFN: fc2(gelu(fc1(y))) ----
    h1 = jnp.dot(y.astype(jnp.bfloat16), w1_ref[...],
                 preferred_element_type=jnp.float32) + b1_ref[...]
    h1 = _gelu_tanh(h1)
    out = jnp.dot(h1.astype(jnp.bfloat16), w2_ref[...],
                  preferred_element_type=jnp.float32) + b2_ref[...]

    out_ref[...] = out


# --------------------------------- wrapper -----------------------------------

def encoder_layer(x, attn_mask_bool, params, *, n_heads, d_k, d_v):
    B, S, D = x.shape
    M = B * S

    x2d = x.reshape(M, D)

    # Block-diagonal additive mask over the folded batch: cross-batch pairs and
    # user-masked in-batch pairs get -1e9 (built once, outside the kernel).
    batch_id = jnp.repeat(jnp.arange(B), S)                  # (M,)
    masked = batch_id[:, None] != batch_id[None, :]          # cross-batch -> masked
    for b in range(B):
        masked = jax.lax.dynamic_update_slice(masked, attn_mask_bool[b], (b * S, b * S))
    add_mask = jnp.where(masked, -1e9, 0.0).astype(jnp.float32)

    bf16 = lambda w: w.astype(jnp.bfloat16)                  # matmul weights -> bf16
    weight_args = [
        params["ln1_g"], params["ln1_b"],
        bf16(params["wq"]), params["bq"], bf16(params["wk"]), params["bk"],
        bf16(params["wv"]), params["bv"], bf16(params["wo"]), params["bo"],
        params["ln2_g"], params["ln2_b"],
        bf16(params["w1"]), params["b1"], bf16(params["w2"]), params["b2"],
    ]

    vmem = lambda: pl.BlockSpec(memory_space=pltpu.MemorySpace.VMEM)
    n_in = 2 + len(weight_args)

    kernel = functools.partial(encoder_layer_kernel, n_heads=n_heads, d_k=d_k, d_v=d_v)

    out2d = pl.pallas_call(
        kernel,
        out_shape=jax.ShapeDtypeStruct((M, D), jnp.float32),
        in_specs=[vmem() for _ in range(n_in)],
        out_specs=vmem(),
    )(x2d, add_mask, *weight_args)

    return out2d.reshape(B, S, D)


# ------------------------------ pure-JAX reference ---------------------------

def encoder_layer_ref(x, attn_mask_bool, params, *, n_heads, d_k, d_v):
    def ln(v, g, b, eps=1e-5):
        mu = jnp.mean(v, -1, keepdims=True)
        var = jnp.mean((v - mu) ** 2, -1, keepdims=True)
        return (v - mu) / jnp.sqrt(var + eps) * g[0] + b[0]

    B, S, D = x.shape
    xn = ln(x, params["ln1_g"], params["ln1_b"])
    q = (xn @ params["wq"] + params["bq"][0]).reshape(B, S, n_heads, d_k).transpose(0, 2, 1, 3)
    k = (xn @ params["wk"] + params["bk"][0]).reshape(B, S, n_heads, d_k).transpose(0, 2, 1, 3)
    v = (xn @ params["wv"] + params["bv"][0]).reshape(B, S, n_heads, d_v).transpose(0, 2, 1, 3)
    scores = jnp.einsum("bhqd,bhkd->bhqk", q, k) / math.sqrt(d_k)
    scores = jnp.where(attn_mask_bool[:, None, :, :], -1e9, scores)
    attn = jax.nn.softmax(scores, axis=-1)
    ctx = jnp.einsum("bhqk,bhkd->bhqd", attn, v).transpose(0, 2, 1, 3).reshape(B, S, n_heads * d_v)
    attn_out = ctx @ params["wo"] + params["bo"][0] + xn
    y = ln(attn_out, params["ln2_g"], params["ln2_b"])
    h1 = jax.nn.gelu(y @ params["w1"] + params["b1"][0], approximate=False)
    return h1 @ params["w2"] + params["b2"][0]


# ----------------------------------- main -------------------------------------

if __name__ == "__main__":
    # config
    B, S = 2, 8
    d_model, d_k, d_v, n_heads, d_ff = 32, 8, 8, 4, 64

    key = jax.random.PRNGKey(0)
    ks = jax.random.split(key, 12)

    def init(k, shape, scale=0.05):
        return (scale * jax.random.normal(k, shape)).astype(jnp.float32)

    # Linear weights stored as (in, out) == PyTorch weight.T ; biases as (1, out)
    params = {
        "ln1_g": jnp.ones((1, d_model), jnp.float32),
        "ln1_b": jnp.zeros((1, d_model), jnp.float32),
        "wq": init(ks[0], (d_model, d_k * n_heads)),
        "bq": init(ks[1], (1, d_k * n_heads), 0.01),
        "wk": init(ks[2], (d_model, d_k * n_heads)),
        "bk": init(ks[3], (1, d_k * n_heads), 0.01),
        "wv": init(ks[4], (d_model, d_v * n_heads)),
        "bv": init(ks[5], (1, d_v * n_heads), 0.01),
        "wo": init(ks[6], (n_heads * d_v, d_model)),
        "bo": init(ks[7], (1, d_model), 0.01),
        "ln2_g": jnp.ones((1, d_model), jnp.float32),
        "ln2_b": jnp.zeros((1, d_model), jnp.float32),
        "w1": init(ks[8], (d_model, d_ff)),
        "b1": init(ks[9], (1, d_ff), 0.01),
        "w2": init(ks[10], (d_ff, d_model)),
        "b2": init(ks[11], (1, d_model), 0.01),
    }

    xkey, mkey = jax.random.split(jax.random.PRNGKey(1))
    x = jax.random.normal(xkey, (B, S, d_model), jnp.float32)

    # padding-style self-attention mask (True == masked), shape (B, S, S)
    valid_len = jnp.array([S, S - 2])
    key_pos = jnp.arange(S)[None, :]                        # (1, S)
    pad = key_pos >= valid_len[:, None]                     # (B, S) True where padded
    attn_mask = jnp.broadcast_to(pad[:, None, :], (B, S, S))

    out = encoder_layer(x, attn_mask, params, n_heads=n_heads, d_k=d_k, d_v=d_v)
    out = jax.block_until_ready(out)

    ref = encoder_layer_ref(x, attn_mask, params, n_heads=n_heads, d_k=d_k, d_v=d_v)
    assert out.shape == (B, S, d_model)
    # Tolerance sized for bf16 matmul operands (weights + activations, f32 accumulation)
    # and tanh-GELU vs the pure-f32 / exact-GELU reference; observed error is ~1e-3 max.
    assert jnp.allclose(out, ref, atol=1e-2, rtol=1e-2), "mismatch vs pure-JAX reference"

    print("KERNEL_OK")
</pallas_src>

<mosaic_0001>
module attributes {stable_mosaic.version = 11 : i64} {
  func.func @encoder_layer_kernel(%arg0: memref<16x32xf32, #tpu.memory_space<vmem>>, %arg1: memref<16x16xf32, #tpu.memory_space<vmem>>, %arg2: memref<1x32xf32, #tpu.memory_space<vmem>>, %arg3: memref<1x32xf32, #tpu.memory_space<vmem>>, %arg4: memref<32x32xbf16, #tpu.memory_space<vmem>>, %arg5: memref<1x32xf32, #tpu.memory_space<vmem>>, %arg6: memref<32x32xbf16, #tpu.memory_space<vmem>>, %arg7: memref<1x32xf32, #tpu.memory_space<vmem>>, %arg8: memref<32x32xbf16, #tpu.memory_space<vmem>>, %arg9: memref<1x32xf32, #tpu.memory_space<vmem>>, %arg10: memref<32x32xbf16, #tpu.memory_space<vmem>>, %arg11: memref<1x32xf32, #tpu.memory_space<vmem>>, %arg12: memref<1x32xf32, #tpu.memory_space<vmem>>, %arg13: memref<1x32xf32, #tpu.memory_space<vmem>>, %arg14: memref<32x64xbf16, #tpu.memory_space<vmem>>, %arg15: memref<1x64xf32, #tpu.memory_space<vmem>>, %arg16: memref<64x32xbf16, #tpu.memory_space<vmem>>, %arg17: memref<1x32xf32, #tpu.memory_space<vmem>>, %arg18: memref<16x32xf32, #tpu.memory_space<vmem>>) attributes {dimension_semantics = [], scalar_prefetch = 0 : i64, scratch_operands = 0 : i64, tpu.core_type = #tpu.core_type<tc>} {
    %c0 = arith.constant 0 : index
    %c0_0 = arith.constant 0 : index
    %0 = vector.load %arg0[%c0, %c0_0] : memref<16x32xf32, #tpu.memory_space<vmem>>, vector<16x32xf32>
    %c0_1 = arith.constant 0 : index
    %c0_2 = arith.constant 0 : index
    %1 = vector.load %arg1[%c0_1, %c0_2] : memref<16x16xf32, #tpu.memory_space<vmem>>, vector<16x16xf32>
    %c0_3 = arith.constant 0 : index
    %c0_4 = arith.constant 0 : index
    %2 = vector.load %arg2[%c0_3, %c0_4] : memref<1x32xf32, #tpu.memory_space<vmem>>, vector<1x32xf32>
    %c0_5 = arith.constant 0 : index
    %c0_6 = arith.constant 0 : index
    %3 = vector.load %arg3[%c0_5, %c0_6] : memref<1x32xf32, #tpu.memory_space<vmem>>, vector<1x32xf32>
    %cst = arith.constant dense<0.000000e+00> : vector<16xf32>
    %4 = vector.multi_reduction <add>, %0, %cst [1] : vector<16x32xf32> to vector<16xf32>
    %5 = vector.shape_cast %4 : vector<16xf32> to vector<16x1xf32>
    %cst_7 = arith.constant 3.200000e+01 : f32
    %6 = vector.broadcast %cst_7 : f32 to vector<16x1xf32>
    %7 = arith.divf %5, %6 : vector<16x1xf32>
    %8 = vector.broadcast %7 : vector<16x1xf32> to vector<16x32xf32>
    %9 = arith.subf %0, %8 : vector<16x32xf32>
    %10 = arith.mulf %9, %9 : vector<16x32xf32>
    %cst_8 = arith.constant dense<0.000000e+00> : vector<16xf32>
    %11 = vector.multi_reduction <add>, %10, %cst_8 [1] : vector<16x32xf32> to vector<16xf32>
    %12 = vector.shape_cast %11 : vector<16xf32> to vector<16x1xf32>
    %cst_9 = arith.constant 3.200000e+01 : f32
    %13 = vector.broadcast %cst_9 : f32 to vector<16x1xf32>
    %14 = arith.divf %12, %13 : vector<16x1xf32>
    %15 = vector.broadcast %7 : vector<16x1xf32> to vector<16x32xf32>
    %16 = arith.subf %0, %15 : vector<16x32xf32>
    %cst_10 = arith.constant 9.99999974E-6 : f32
    %17 = vector.broadcast %cst_10 : f32 to vector<16x1xf32>
    %18 = arith.addf %14, %17 : vector<16x1xf32>
    %19 = math.rsqrt %18 : vector<16x1xf32>
    %20 = vector.broadcast %19 : vector<16x1xf32> to vector<16x32xf32>
    %21 = arith.mulf %16, %20 : vector<16x32xf32>
    %22 = vector.broadcast %2 : vector<1x32xf32> to vector<16x32xf32>
    %23 = arith.mulf %21, %22 : vector<16x32xf32>
    %24 = vector.broadcast %3 : vector<1x32xf32> to vector<16x32xf32>
    %25 = arith.addf %23, %24 : vector<16x32xf32>
    %26 = arith.truncf %25 : vector<16x32xf32> to vector<16x32xbf16>
    %c0_11 = arith.constant 0 : index
    %c0_12 = arith.constant 0 : index
    %27 = vector.load %arg4[%c0_11, %c0_12] : memref<32x32xbf16, #tpu.memory_space<vmem>>, vector<32x32xbf16>
    %cst_13 = arith.constant dense<0.000000e+00> : vector<16x32xf32>
    %28 = tpu.matmul %26, %27, %cst_13 {dimension_numbers = #tpu.dot_dimension_numbers<[1], [0], [0], [1], [0, 0, 1, 1], [], []>} : vector<16x32xbf16>, vector<32x32xbf16>, vector<16x32xf32> -> vector<16x32xf32>
    %c0_14 = arith.constant 0 : index
    %c0_15 = arith.constant 0 : index
    %29 = vector.load %arg5[%c0_14, %c0_15] : memref<1x32xf32, #tpu.memory_space<vmem>>, vector<1x32xf32>
    %30 = vector.broadcast %29 : vector<1x32xf32> to vector<16x32xf32>
    %31 = arith.addf %28, %30 : vector<16x32xf32>
    %c0_16 = arith.constant 0 : index
    %c0_17 = arith.constant 0 : index
    %32 = vector.load %arg6[%c0_16, %c0_17] : memref<32x32xbf16, #tpu.memory_space<vmem>>, vector<32x32xbf16>
    %cst_18 = arith.constant dense<0.000000e+00> : vector<16x32xf32>
    %33 = tpu.matmul %26, %32, %cst_18 {dimension_numbers = #tpu.dot_dimension_numbers<[1], [0], [0], [1], [0, 0, 1, 1], [], []>} : vector<16x32xbf16>, vector<32x32xbf16>, vector<16x32xf32> -> vector<16x32xf32>
    %c0_19 = arith.constant 0 : index
    %c0_20 = arith.constant 0 : index
    %34 = vector.load %arg7[%c0_19, %c0_20] : memref<1x32xf32, #tpu.memory_space<vmem>>, vector<1x32xf32>
    %35 = vector.broadcast %34 : vector<1x32xf32> to vector<16x32xf32>
    %36 = arith.addf %33, %35 : vector<16x32xf32>
    %c0_21 = arith.constant 0 : index
    %c0_22 = arith.constant 0 : index
    %37 = vector.load %arg8[%c0_21, %c0_22] : memref<32x32xbf16, #tpu.memory_space<vmem>>, vector<32x32xbf16>
    %cst_23 = arith.constant dense<0.000000e+00> : vector<16x32xf32>
    %38 = tpu.matmul %26, %37, %cst_23 {dimension_numbers = #tpu.dot_dimension_numbers<[1], [0], [0], [1], [0, 0, 1, 1], [], []>} : vector<16x32xbf16>, vector<32x32xbf16>, vector<16x32xf32> -> vector<16x32xf32>
    %c0_24 = arith.constant 0 : index
    %c0_25 = arith.constant 0 : index
    %39 = vector.load %arg9[%c0_24, %c0_25] : memref<1x32xf32, #tpu.memory_space<vmem>>, vector<1x32xf32>
    %40 = vector.broadcast %39 : vector<1x32xf32> to vector<16x32xf32>
    %41 = arith.addf %38, %40 : vector<16x32xf32>
    %42 = arith.truncf %31 : vector<16x32xf32> to vector<16x32xbf16>
    %43 = arith.truncf %36 : vector<16x32xf32> to vector<16x32xbf16>
    %44 = arith.truncf %41 : vector<16x32xf32> to vector<16x32xbf16>
    %45 = vector.extract_strided_slice %42 {offsets = [0, 0], sizes = [16, 8], strides = [1, 1]} : vector<16x32xbf16> to vector<16x8xbf16>
    %46 = vector.extract_strided_slice %43 {offsets = [0, 0], sizes = [16, 8], strides = [1, 1]} : vector<16x32xbf16> to vector<16x8xbf16>
    %47 = vector.extract_strided_slice %44 {offsets = [0, 0], sizes = [16, 8], strides = [1, 1]} : vector<16x32xbf16> to vector<16x8xbf16>
    %cst_26 = arith.constant dense<0.000000e+00> : vector<16x16xf32>
    %48 = tpu.matmul %45, %46, %cst_26 {dimension_numbers = #tpu.dot_dimension_numbers<[1], [1], [0], [0], [0, 0, 1, 0], [], []>} : vector<16x8xbf16>, vector<16x8xbf16>, vector<16x16xf32> -> vector<16x16xf32>
    %cst_27 = arith.constant 0.353553385 : f32
    %49 = vector.broadcast %cst_27 : f32 to vector<16x16xf32>
    %50 = arith.mulf %48, %49 : vector<16x16xf32>
    %51 = arith.addf %50, %1 : vector<16x16xf32>
    %cst_28 = arith.constant dense<0xFF800000> : vector<16xf32>
    %52 = vector.multi_reduction <maximumf>, %51, %cst_28 [1] : vector<16x16xf32> to vector<16xf32>
    %53 = vector.shape_cast %52 : vector<16xf32> to vector<16x1xf32>
    %54 = vector.broadcast %53 : vector<16x1xf32> to vector<16x16xf32>
    %55 = arith.subf %51, %54 : vector<16x16xf32>
    %56 = math.exp %55 : vector<16x16xf32>
    %cst_29 = arith.constant dense<0.000000e+00> : vector<16xf32>
    %57 = vector.multi_reduction <add>, %56, %cst_29 [1] : vector<16x16xf32> to vector<16xf32>
    %58 = vector.shape_cast %57 : vector<16xf32> to vector<16x1xf32>
    %59 = tpu.reciprocal %58 {approx = true} : vector<16x1xf32> -> vector<16x1xf32>
    %60 = vector.broadcast %59 : vector<16x1xf32> to vector<16x16xf32>
    %61 = arith.mulf %56, %60 : vector<16x16xf32>
    %62 = arith.truncf %61 : vector<16x16xf32> to vector<16x16xbf16>
    %cst_30 = arith.constant dense<0.000000e+00> : vector<16x8xf32>
    %63 = tpu.matmul %62, %47, %cst_30 {dimension_numbers = #tpu.dot_dimension_numbers<[1], [0], [0], [1], [0, 0, 1, 1], [], []>} : vector<16x16xbf16>, vector<16x8xbf16>, vector<16x8xf32> -> vector<16x8xf32>
    %64 = vector.extract_strided_slice %42 {offsets = [0, 8], sizes = [16, 8], strides = [1, 1]} : vector<16x32xbf16> to vector<16x8xbf16>
    %65 = vector.extract_strided_slice %43 {offsets = [0, 8], sizes = [16, 8], strides = [1, 1]} : vector<16x32xbf16> to vector<16x8xbf16>
    %66 = vector.extract_strided_slice %44 {offsets = [0, 8], sizes = [16, 8], strides = [1, 1]} : vector<16x32xbf16> to vector<16x8xbf16>
    %cst_31 = arith.constant dense<0.000000e+00> : vector<16x16xf32>
    %67 = tpu.matmul %64, %65, %cst_31 {dimension_numbers = #tpu.dot_dimension_numbers<[1], [1], [0], [0], [0, 0, 1, 0], [], []>} : vector<16x8xbf16>, vector<16x8xbf16>, vector<16x16xf32> -> vector<16x16xf32>
    %cst_32 = arith.constant 0.353553385 : f32
    %68 = vector.broadcast %cst_32 : f32 to vector<16x16xf32>
    %69 = arith.mulf %67, %68 : vector<16x16xf32>
    %70 = arith.addf %69, %1 : vector<16x16xf32>
    %cst_33 = arith.constant dense<0xFF800000> : vector<16xf32>
    %71 = vector.multi_reduction <maximumf>, %70, %cst_33 [1] : vector<16x16xf32> to vector<16xf32>
    %72 = vector.shape_cast %71 : vector<16xf32> to vector<16x1xf32>
    %73 = vector.broadcast %72 : vector<16x1xf32> to vector<16x16xf32>
    %74 = arith.subf %70, %73 : vector<16x16xf32>
    %75 = math.exp %74 : vector<16x16xf32>
    %cst_34 = arith.constant dense<0.000000e+00> : vector<16xf32>
    %76 = vector.multi_reduction <add>, %75, %cst_34 [1] : vector<16x16xf32> to vector<16xf32>
    %77 = vector.shape_cast %76 : vector<16xf32> to vector<16x1xf32>
    %78 = tpu.reciprocal %77 {approx = true} : vector<16x1xf32> -> vector<16x1xf32>
    %79 = vector.broadcast %78 : vector<16x1xf32> to vector<16x16xf32>
    %80 = arith.mulf %75, %79 : vector<16x16xf32>
    %81 = arith.truncf %80 : vector<16x16xf32> to vector<16x16xbf16>
    %cst_35 = arith.constant dense<0.000000e+00> : vector<16x8xf32>
    %82 = tpu.matmul %81, %66, %cst_35 {dimension_numbers = #tpu.dot_dimension_numbers<[1], [0], [0], [1], [0, 0, 1, 1], [], []>} : vector<16x16xbf16>, vector<16x8xbf16>, vector<16x8xf32> -> vector<16x8xf32>
    %83 = vector.extract_strided_slice %42 {offsets = [0, 16], sizes = [16, 8], strides = [1, 1]} : vector<16x32xbf16> to vector<16x8xbf16>
    %84 = vector.extract_strided_slice %43 {offsets = [0, 16], sizes = [16, 8], strides = [1, 1]} : vector<16x32xbf16> to vector<16x8xbf16>
    %85 = vector.extract_strided_slice %44 {offsets = [0, 16], sizes = [16, 8], strides = [1, 1]} : vector<16x32xbf16> to vector<16x8xbf16>
    %cst_36 = arith.constant dense<0.000000e+00> : vector<16x16xf32>
    %86 = tpu.matmul %83, %84, %cst_36 {dimension_numbers = #tpu.dot_dimension_numbers<[1], [1], [0], [0], [0, 0, 1, 0], [], []>} : vector<16x8xbf16>, vector<16x8xbf16>, vector<16x16xf32> -> vector<16x16xf32>
    %cst_37 = arith.constant 0.353553385 : f32
    %87 = vector.broadcast %cst_37 : f32 to vector<16x16xf32>
    %88 = arith.mulf %86, %87 : vector<16x16xf32>
    %89 = arith.addf %88, %1 : vector<16x16xf32>
    %cst_38 = arith.constant dense<0xFF800000> : vector<16xf32>
    %90 = vector.multi_reduction <maximumf>, %89, %cst_38 [1] : vector<16x16xf32> to vector<16xf32>
    %91 = vector.shape_cast %90 : vector<16xf32> to vector<16x1xf32>
    %92 = vector.broadcast %91 : vector<16x1xf32> to vector<16x16xf32>
    %93 = arith.subf %89, %92 : vector<16x16xf32>
    %94 = math.exp %93 : vector<16x16xf32>
    %cst_39 = arith.constant dense<0.000000e+00> : vector<16xf32>
    %95 = vector.multi_reduction <add>, %94, %cst_39 [1] : vector<16x16xf32> to vector<16xf32>
    %96 = vector.shape_cast %95 : vector<16xf32> to vector<16x1xf32>
    %97 = tpu.reciprocal %96 {approx = true} : vector<16x1xf32> -> vector<16x1xf32>
    %98 = vector.broadcast %97 : vector<16x1xf32> to vector<16x16xf32>
    %99 = arith.mulf %94, %98 : vector<16x16xf32>
    %100 = arith.truncf %99 : vector<16x16xf32> to vector<16x16xbf16>
    %cst_40 = arith.constant dense<0.000000e+00> : vector<16x8xf32>
    %101 = tpu.matmul %100, %85, %cst_40 {dimension_numbers = #tpu.dot_dimension_numbers<[1], [0], [0], [1], [0, 0, 1, 1], [], []>} : vector<16x16xbf16>, vector<16x8xbf16>, vector<16x8xf32> -> vector<16x8xf32>
    %102 = vector.extract_strided_slice %42 {offsets = [0, 24], sizes = [16, 8], strides = [1, 1]} : vector<16x32xbf16> to vector<16x8xbf16>
    %103 = vector.extract_strided_slice %43 {offsets = [0, 24], sizes = [16, 8], strides = [1, 1]} : vector<16x32xbf16> to vector<16x8xbf16>
    %104 = vector.extract_strided_slice %44 {offsets = [0, 24], sizes = [16, 8], strides = [1, 1]} : vector<16x32xbf16> to vector<16x8xbf16>
    %cst_41 = arith.constant dense<0.000000e+00> : vector<16x16xf32>
    %105 = tpu.matmul %102, %103, %cst_41 {dimension_numbers = #tpu.dot_dimension_numbers<[1], [1], [0], [0], [0, 0, 1, 0], [], []>} : vector<16x8xbf16>, vector<16x8xbf16>, vector<16x16xf32> -> vector<16x16xf32>
    %cst_42 = arith.constant 0.353553385 : f32
    %106 = vector.broadcast %cst_42 : f32 to vector<16x16xf32>
    %107 = arith.mulf %105, %106 : vector<16x16xf32>
    %108 = arith.addf %107, %1 : vector<16x16xf32>
    %cst_43 = arith.constant dense<0xFF800000> : vector<16xf32>
    %109 = vector.multi_reduction <maximumf>, %108, %cst_43 [1] : vector<16x16xf32> to vector<16xf32>
    %110 = vector.shape_cast %109 : vector<16xf32> to vector<16x1xf32>
    %111 = vector.broadcast %110 : vector<16x1xf32> to vector<16x16xf32>
    %112 = arith.subf %108, %111 : vector<16x16xf32>
    %113 = math.exp %112 : vector<16x16xf32>
    %cst_44 = arith.constant dense<0.000000e+00> : vector<16xf32>
    %114 = vector.multi_reduction <add>, %113, %cst_44 [1] : vector<16x16xf32> to vector<16xf32>
    %115 = vector.shape_cast %114 : vector<16xf32> to vector<16x1xf32>
    %116 = tpu.reciprocal %115 {approx = true} : vector<16x1xf32> -> vector<16x1xf32>
    %117 = vector.broadcast %116 : vector<16x1xf32> to vector<16x16xf32>
    %118 = arith.mulf %113, %117 : vector<16x16xf32>
    %119 = arith.truncf %118 : vector<16x16xf32> to vector<16x16xbf16>
    %cst_45 = arith.constant dense<0.000000e+00> : vector<16x8xf32>
    %120 = tpu.matmul %119, %104, %cst_45 {dimension_numbers = #tpu.dot_dimension_numbers<[1], [0], [0], [1], [0, 0, 1, 1], [], []>} : vector<16x16xbf16>, vector<16x8xbf16>, vector<16x8xf32> -> vector<16x8xf32>
    %121 = tpu.concatenate %63, %82, %101, %120 in 1 : vector<16x8xf32>, vector<16x8xf32>, vector<16x8xf32>, vector<16x8xf32> -> vector<16x32xf32>
    %122 = arith.truncf %121 : vector<16x32xf32> to vector<16x32xbf16>
    %c0_46 = arith.constant 0 : index
    %c0_47 = arith.constant 0 : index
    %123 = vector.load %arg10[%c0_46, %c0_47] : memref<32x32xbf16, #tpu.memory_space<vmem>>, vector<32x32xbf16>
    %cst_48 = arith.constant dense<0.000000e+00> : vector<16x32xf32>
    %124 = tpu.matmul %122, %123, %cst_48 {dimension_numbers = #tpu.dot_dimension_numbers<[1], [0], [0], [1], [0, 0, 1, 1], [], []>} : vector<16x32xbf16>, vector<32x32xbf16>, vector<16x32xf32> -> vector<16x32xf32>
    %c0_49 = arith.constant 0 : index
    %c0_50 = arith.constant 0 : index
    %125 = vector.load %arg11[%c0_49, %c0_50] : memref<1x32xf32, #tpu.memory_space<vmem>>, vector<1x32xf32>
    %126 = vector.broadcast %125 : vector<1x32xf32> to vector<16x32xf32>
    %127 = arith.addf %124, %126 : vector<16x32xf32>
    %128 = arith.addf %127, %25 : vector<16x32xf32>
    %c0_51 = arith.constant 0 : index
    %c0_52 = arith.constant 0 : index
    %129 = vector.load %arg12[%c0_51, %c0_52] : memref<1x32xf32, #tpu.memory_space<vmem>>, vector<1x32xf32>
    %c0_53 = arith.constant 0 : index
    %c0_54 = arith.constant 0 : index
    %130 = vector.load %arg13[%c0_53, %c0_54] : memref<1x32xf32, #tpu.memory_space<vmem>>, vector<1x32xf32>
    %cst_55 = arith.constant dense<0.000000e+00> : vector<16xf32>
    %131 = vector.multi_reduction <add>, %128, %cst_55 [1] : vector<16x32xf32> to vector<16xf32>
    %132 = vector.shape_cast %131 : vector<16xf32> to vector<16x1xf32>
    %cst_56 = arith.constant 3.200000e+01 : f32
    %133 = vector.broadcast %cst_56 : f32 to vector<16x1xf32>
    %134 = arith.divf %132, %133 : vector<16x1xf32>
    %135 = vector.broadcast %134 : vector<16x1xf32> to vector<16x32xf32>
    %136 = arith.subf %128, %135 : vector<16x32xf32>
    %137 = arith.mulf %136, %136 : vector<16x32xf32>
    %cst_57 = arith.constant dense<0.000000e+00> : vector<16xf32>
    %138 = vector.multi_reduction <add>, %137, %cst_57 [1] : vector<16x32xf32> to vector<16xf32>
    %139 = vector.shape_cast %138 : vector<16xf32> to vector<16x1xf32>
    %cst_58 = arith.constant 3.200000e+01 : f32
    %140 = vector.broadcast %cst_58 : f32 to vector<16x1xf32>
    %141 = arith.divf %139, %140 : vector<16x1xf32>
    %142 = vector.broadcast %134 : vector<16x1xf32> to vector<16x32xf32>
    %143 = arith.subf %128, %142 : vector<16x32xf32>
    %cst_59 = arith.constant 9.99999974E-6 : f32
    %144 = vector.broadcast %cst_59 : f32 to vector<16x1xf32>
    %145 = arith.addf %141, %144 : vector<16x1xf32>
    %146 = math.rsqrt %145 : vector<16x1xf32>
    %147 = vector.broadcast %146 : vector<16x1xf32> to vector<16x32xf32>
    %148 = arith.mulf %143, %147 : vector<16x32xf32>
    %149 = vector.broadcast %129 : vector<1x32xf32> to vector<16x32xf32>
    %150 = arith.mulf %148, %149 : vector<16x32xf32>
    %151 = vector.broadcast %130 : vector<1x32xf32> to vector<16x32xf32>
    %152 = arith.addf %150, %151 : vector<16x32xf32>
    %153 = arith.truncf %152 : vector<16x32xf32> to vector<16x32xbf16>
    %c0_60 = arith.constant 0 : index
    %c0_61 = arith.constant 0 : index
    %154 = vector.load %arg14[%c0_60, %c0_61] : memref<32x64xbf16, #tpu.memory_space<vmem>>, vector<32x64xbf16>
    %cst_62 = arith.constant dense<0.000000e+00> : vector<16x64xf32>
    %155 = tpu.matmul %153, %154, %cst_62 {dimension_numbers = #tpu.dot_dimension_numbers<[1], [0], [0], [1], [0, 0, 1, 1], [], []>} : vector<16x32xbf16>, vector<32x64xbf16>, vector<16x64xf32> -> vector<16x64xf32>
    %c0_63 = arith.constant 0 : index
    %c0_64 = arith.constant 0 : index
    %156 = vector.load %arg15[%c0_63, %c0_64] : memref<1x64xf32, #tpu.memory_space<vmem>>, vector<1x64xf32>
    %157 = vector.broadcast %156 : vector<1x64xf32> to vector<16x64xf32>
    %158 = arith.addf %155, %157 : vector<16x64xf32>
    %cst_65 = arith.constant 5.000000e-01 : f32
    %159 = vector.broadcast %cst_65 : f32 to vector<16x64xf32>
    %160 = arith.mulf %159, %158 : vector<16x64xf32>
    %cst_66 = arith.constant 4.471500e-02 : f32
    %161 = vector.broadcast %cst_66 : f32 to vector<16x64xf32>
    %162 = arith.mulf %161, %158 : vector<16x64xf32>
    %163 = arith.mulf %162, %158 : vector<16x64xf32>
    %164 = arith.mulf %163, %158 : vector<16x64xf32>
    %165 = arith.addf %158, %164 : vector<16x64xf32>
    %cst_67 = arith.constant 0.797884583 : f32
    %166 = vector.broadcast %cst_67 : f32 to vector<16x64xf32>
    %167 = arith.mulf %166, %165 : vector<16x64xf32>
    %168 = math.tanh %167 : vector<16x64xf32>
    %cst_68 = arith.constant 1.000000e+00 : f32
    %169 = vector.broadcast %cst_68 : f32 to vector<16x64xf32>
    %170 = arith.addf %169, %168 : vector<16x64xf32>
    %171 = arith.mulf %160, %170 : vector<16x64xf32>
    %172 = arith.truncf %171 : vector<16x64xf32> to vector<16x64xbf16>
    %c0_69 = arith.constant 0 : index
    %c0_70 = arith.constant 0 : index
    %173 = vector.load %arg16[%c0_69, %c0_70] : memref<64x32xbf16, #tpu.memory_space<vmem>>, vector<64x32xbf16>
    %cst_71 = arith.constant dense<0.000000e+00> : vector<16x32xf32>
    %174 = tpu.matmul %172, %173, %cst_71 {dimension_numbers = #tpu.dot_dimension_numbers<[1], [0], [0], [1], [0, 0, 1, 1], [], []>} : vector<16x64xbf16>, vector<64x32xbf16>, vector<16x32xf32> -> vector<16x32xf32>
    %c0_72 = arith.constant 0 : index
    %c0_73 = arith.constant 0 : index
    %175 = vector.load %arg17[%c0_72, %c0_73] : memref<1x32xf32, #tpu.memory_space<vmem>>, vector<1x32xf32>
    %176 = vector.broadcast %175 : vector<1x32xf32> to vector<16x32xf32>
    %177 = arith.addf %174, %176 : vector<16x32xf32>
    %c0_74 = arith.constant 0 : index
    %c0_75 = arith.constant 0 : index
    %178 = vector.load %arg18[%c0_74, %c0_75] : memref<16x32xf32, #tpu.memory_space<vmem>>, vector<16x32xf32>
    tpu.vector_store %arg18[%c0_74, %c0_75], %177 {strides = array<i32>} : memref<16x32xf32, #tpu.memory_space<vmem>>, vector<16x32xf32>,
    return
  }
}

</mosaic_0001>

<bundles_post_ra>
// kernel: tpu_custom_call.1
= control target key start
LH: loop header
LB: loop body
LE: loop exit
PB: predicated region body
PF: predicated region fallthrough
CT: control target
= control target key end

     0   :  { %s1425_s0 = inlined_call_operand.vmem [shape: f32[16,32], index: 0, kind: input, shape index: {}]   ;;  %s1426_s1 = inlined_call_operand.vmem [shape: f32[16,16], index: 1, kind: input, shape index: {}]   ;;  %s1427_s2 = inlined_call_operand.vmem [shape: f32[1,32], index: 2, kind: input, shape index: {}]   ;;  %s1428_s3 = inlined_call_operand.vmem [shape: f32[1,32], index: 3, kind: input, shape index: {}]   ;;  %s1429_s4 = inlined_call_operand.vmem [shape: bf16[32,32], index: 4, kind: input, shape index: {}]   ;;  %s1430_s5 = inlined_call_operand.vmem [shape: f32[1,32], index: 5, kind: input, shape index: {}]   ;;  %s1431_s6 = inlined_call_operand.hbm [shape: bf16[32,32], index: 6, kind: input, shape index: {}]   ;;  %s1432_s7 = inlined_call_operand.vmem [shape: f32[1,32], index: 7, kind: input, shape index: {}]   ;;  %s1433_s8 = inlined_call_operand.hbm [shape: bf16[32,32], index: 8, kind: input, shape index: {}]   ;;  %s1434_s9 = inlined_call_operand.vmem [shape: f32[1,32], index: 9, kind: input, shape index: {}]   ;;  %s1435_s10 = inlined_call_operand.hbm [shape: bf16[32,32], index: 10, kind: input, shape index: {}]   ;;  %s1436_s11 = inlined_call_operand.vmem [shape: f32[1,32], index: 11, kind: input, shape index: {}]   ;;  %s1437_s12 = inlined_call_operand.vmem [shape: f32[1,32], index: 12, kind: input, shape index: {}]   ;;  %s1438_s13 = inlined_call_operand.vmem [shape: f32[1,32], index: 13, kind: input, shape index: {}]   ;;  %s1439_s14 = inlined_call_operand.hbm [shape: bf16[32,64], index: 14, kind: input, shape index: {}]   ;;  %s1440_s15 = inlined_call_operand.vmem [shape: f32[1,64], index: 15, kind: input, shape index: {}]   ;;  %s1441_s16 = inlined_call_operand.vmem [shape: bf16[64,32], index: 16, kind: input, shape index: {}]   ;;  %s1442_s17 = inlined_call_operand.vmem [shape: f32[1,32], index: 17, kind: input, shape index: {}]   ;;  %s1443_s18 = inlined_call_operand.hbm [shape: f32[16,32], index: 18, kind: output, shape index: {}]  }
   0x1   :  { %1446 = sst [smem:[#allocation15_spill]] %s1425_s0 }
   0x2   :  { %1447 = sst [smem:[#allocation16_spill]] %s1426_s1 }
   0x3   :  { %1448 = sst [smem:[#allocation17_spill]] %s1427_s2 }
   0x4   :  { %23 = vsyncpa [#allocation3], 0 }
   0x5   :  { %24 = vsyncpa [#allocation6], 0 }
   0x6   :  { %25 = vsyncpa [#allocation9], 0 }
   0x7   :  { %26 = vsyncpa [#allocation4], 0  ;;  %s58_s29 = sshll.u32 %s1433_s8, 4  ;;  %s1158_s30 = smov [#allocation5]   ;;  %s59_s29 = int_to_ptr.hbm [resolvable:$true] %s58_s29 }
   0x8   :  { %s60_s0 = sshll.u32 %s1158_s30, 4  ;;  %s43_s20 = sshll.u32 %s1431_s6, 4  ;;  %s61_s0 = int_to_ptr.vmem [resolvable:$true] %s60_s0  ;;  %s44_s20 = int_to_ptr.hbm [resolvable:$true] %s43_s20 }
   0x9   :  { %s1159_s21 = smov 64   ;;  %s1160_s22 = smov 4  }
   0xa   :  { %66 = dma.hbm_to_vmem [thread:$0]  %s59_s29, 256, %s61_s0, [#allocation6], %s1159_s21, %s1159_s21, %s1160_s22  }
   0xb   :  { %s1161_s2 = smov [#allocation2]   ;;  %s73_s26 = sshll.u32 %s1435_s10, 4  ;;  %s74_s26 = int_to_ptr.hbm [resolvable:$true] %s73_s26 }
   0xc   :  { %s45_s23 = sshll.u32 %s1161_s2, 4  ;;  %s92_s28 = sshll.u32 %s1439_s14, 4  ;;  %s46_s23 = int_to_ptr.vmem [resolvable:$true] %s45_s23  ;;  %s93_s28 = int_to_ptr.hbm [resolvable:$true] %s92_s28 }
   0xd   :  { %51 = dma.hbm_to_vmem [thread:$0]  %s44_s20, 256, %s46_s23, [#allocation3], %s1159_s21, %s1159_s21, %s1160_s22  }
   0xe   :  { %s1162_s30 = smov [#allocation7]   ;;  %s1163_s6 = smov [#allocation8]  }
   0xf   :  { %s75_s19 = sshll.u32 %s1162_s30, 4  ;;  %s94_s29 = sshll.u32 %s1163_s6, 4  ;;  %s76_s19 = int_to_ptr.vmem [resolvable:$true] %s75_s19  ;;  %s95_s29 = int_to_ptr.vmem [resolvable:$true] %s94_s29 }
  0x10   :  { %81 = dma.hbm_to_vmem [thread:$0]  %s74_s26, 256, %s76_s19, [#allocation6], %s1159_s21, %s1159_s21, %s1160_s22  }
  0x11   :  { %100 = dma.hbm_to_vmem [thread:$0]  %s93_s28, 256, %s95_s29, [#allocation9], %s1159_s21, %s1159_s21, %s1160_s22  }
  0x12   :  { %1150 = dma.done.wait [#allocation3], 256  }
  0x13   :  { %1151 = vsyncadd [#allocation3], 4294967040 }
  0x14   :  { %1152 = dma.done.wait [#allocation6], 512  }
  0x15   :  { %1153 = vsyncadd [#allocation6], 4294966784 }
  0x16   :  { %1154 = dma.done.wait [#allocation9], 256  }
  0x17   :  { %1155 = vsyncadd [#allocation9], 4294967040  ;;  %vm130_vm0 = vcmask 261120   ;;  %s1449_s1 = sld [smem:[#allocation15_spill]]  ;;  %v1164_v4 = vmov 32.0   ;;  %v931_v21 = vld [vmem:[%s1429_s4 + $0x8] sm:$0xff] }
  0x18   :  { %984 = vrcp.f32 %v1164_v4  ;;  %v933_v22 = vld [vmem:[#allocation2 + $0x8] sm:$0xff]  ;;  %v935_v23 = vld [vmem:[#allocation5 + $0x8] sm:$0xff]  ;;  %222 = vmatpush.bf16.msra.mxu0 %v931_v21  ;;  %v930_v25 = vld [vmem:[%s1429_s4] sm:$0xff]  ;;  %s1450_s25 = sld [smem:[#allocation17_spill]]  ;;  %vm314_vm8 = vcmask 64512   ;;  %vm339_vm9 = vcmask 130048  }
  0x19   :  { %256 = vmatpush.bf16.msra.mxu1 %v933_v22  ;;  %v932_v26 = vld [vmem:[#allocation2] sm:$0xff]  ;;  %290 = vmatpush.bf16.msra.mxu2 %v935_v23  ;;  %v934_v28 = vld [vmem:[#allocation5] sm:$0xff]  ;;  %s1451_s0 = sld [smem:[#allocation16_spill]]  ;;  %s1168_s20 = smov 8   ;;  %vm627_vm10 = vcmask 195584  }
  0x1a   :  { %v975_v51 = vld [vmem:[%s1428_s3] ss:$0 sm:$0xff]  ;;  %s1169_s21 = smov 16   ;;  %s1170_s22 = smov 24  }
  0x1b   :  { %v977_v58 = vld [vmem:[%s1432_s7] ss:$0 sm:$0xff]  ;;  %s1165_s7 = smov 104   ;;  %s1171_s29 = smov [#allocation10]  }
  0x1c   :  { %223 = vmatpush.bf16.msra.mxu0 %v930_v25  ;;  %v978_v61 = vld [vmem:[%s1434_s9] ss:$0 sm:$0xff]  ;;  %s1166_s9 = smov 112   ;;  %s843_s10 = sshll.u32 %s1171_s29, 4  ;;  %s844_s10 = int_to_ptr.vmem [resolvable:$true] %s843_s10 }
  0x1d   :  { %v124_v0 = vld [vmem:[%s1449_s1] sm:$0xff]  ;;  %v125_v2 = vld [vmem:[%s1449_s1 + $0x8] sm:$0xff]  ;;  %257 = vmatpush.bf16.msra.mxu1 %v932_v26  ;;  %291 = vmatpush.bf16.msra.mxu2 %v934_v28 }
  0x1e   :  { %v131_v1 = vsel %vm130_vm0, %v124_v0, 0.0  ;;  %v134_v3 = vsel %vm130_vm0, %v125_v2, 0.0  ;;  %v985_v5 = vpop.eup %984  ;;  %v974_v46 = vld [vmem:[%s1450_s25] ss:$0 sm:$0xff] }
  0x1f   :  { %132 = vadd.xlane.f32.xlu0 %v131_v1  ;;  %v138_v6 = vmul.f32 32.0, %v985_v5  ;;  %vm142_vm1 = vweird.f32 %v985_v5 }
  0x21   :  { %v139_v7 = vsub.f32 1.0, %v138_v6 }
  0x23   :  { %v140_v8 = vmul.f32 %v985_v5, %v139_v7 }
  0x25   :  { %v141_v9 = vadd.f32 %v985_v5, %v140_v8 }
  0x27   :  { %135 = vadd.xlane.f32.xlu0 %v134_v3  ;;  %v1288_v10 = vsel %vm142_vm1, %v985_v5, %v141_v9 }
  0x92   :  { %v133_v11 = vpop.xlane.xlu0 %132 }
  0x93   :  { %v144_v12 = vmul.f32 %v1288_v10, %v133_v11 }
  0x95   :  { %v146_v13 = vsub.f32 %v124_v0, %v144_v12  ;;  %v976_v0 = vld [vmem:[%s1430_s5] ss:$0 sm:$0xff]  ;;  %s1167_s5 = smov 120  }
  0x97   :  { %v148_v14 = vmul.f32 %v146_v13, %v146_v13 }
  0x99   :  { %v150_v15 = vsel %vm130_vm0, %v148_v14, 0.0 }
  0x9a   :  { %151 = vadd.xlane.f32.xlu1 %v150_v15  ;;  %v136_v16 = vpop.xlane.xlu0 %135 }
  0x9b   :  { %v145_v17 = vmul.f32 %v1288_v10, %v136_v16 }
  0x9d   :  { %v147_v18 = vsub.f32 %v125_v2, %v145_v17 }
  0x9f   :  { %v149_v19 = vmul.f32 %v147_v18, %v147_v18 }
  0xa1   :  { %v153_v20 = vsel %vm130_vm0, %v149_v19, 0.0 }
  0xa2   :  { %154 = vadd.xlane.f32.xlu1 %v153_v20 }
 0x10d   :  { %v152_v24 = vpop.xlane.xlu1 %151 }
 0x10e   :  { %v156_v27 = vmul.f32 %v152_v24, %v1288_v10 }
 0x110   :  { %v158_v29 = vadd.f32 1e-05, %v156_v27 }
 0x112   :  { %986 = vrsqrt.f32 %v158_v29  ;;  %vm166_vm3 = vweird.f32 %v158_v29 }
 0x115   :  { %v155_v30 = vpop.xlane.xlu1 %154 }
 0x116   :  { %v157_v31 = vmul.f32 %v155_v30, %v1288_v10 }
 0x118   :  { %v987_v32 = vpop.eup %986  ;;  %v159_v33 = vadd.f32 1e-05, %v157_v31 }
 0x119   :  { %v161_v34 = vmul.f32 %v987_v32, %v158_v29  ;;  %vm167_vm2 = vweird.f32 %v987_v32 }
 0x11a   :  { %988 = vrsqrt.f32 %v159_v33  ;;  %vm168_vm4 = vmor %vm166_vm3, %vm167_vm2  ;;  %vm176_vm6 = vweird.f32 %v159_v33  ;;  %vm819_vm2 = vcmask 523264  }
 0x11b   :  { %v162_v35 = vmul.f32 %v987_v32, %v161_v34  ;;  %v126_v34 = vld [vmem:[%s1451_s0] sm:$0xff] }
 0x11d   :  { %v163_v36 = vmul.f32 0.5, %v162_v35 }
 0x11f   :  { %v164_v37 = vsub.f32 1.5, %v163_v36 }
 0x120   :  { %v989_v38 = vpop.eup %988 }
 0x121   :  { %v165_v39 = vmul.f32 %v987_v32, %v164_v37  ;;  %v171_v40 = vmul.f32 %v989_v38, %v159_v33  ;;  %vm177_vm5 = vweird.f32 %v989_v38 }
 0x122   :  { %vm178_vm7 = vmor %vm176_vm6, %vm177_vm5 }
 0x123   :  { %v172_v41 = vmul.f32 %v989_v38, %v171_v40  ;;  %v169_v42 = vsel %vm168_vm4, %v987_v32, %v165_v39 }
 0x124   :  { %v180_v45 = vmul.f32 %v169_v42, %v146_v13 }
 0x125   :  { %v173_v43 = vmul.f32 0.5, %v172_v41 }
 0x126   :  { %v185_v50 = vmul.f32 %v974_v46, %v180_v45 }
 0x127   :  { %v174_v44 = vsub.f32 1.5, %v173_v43 }
 0x128   :  { %v1308_v53 = vadd.f32 %v975_v51, %v185_v50 }
 0x129   :  { %v175_v47 = vmul.f32 %v989_v38, %v174_v44  ;;  %v127_v44 = vld [vmem:[%s1451_s0 + $0x8] sm:$0xff]  ;;  %s1172_s0 = smov 128  }
 0x12b   :  { %v179_v48 = vsel %vm178_vm7, %v989_v38, %v175_v47 }
 0x12c   :  { %v181_v49 = vmul.f32 %v179_v48, %v147_v18 }
 0x12e   :  { %v186_v52 = vmul.f32 %v974_v46, %v181_v49 }
 0x130   :  { %v1310_v54 = vadd.f32 %v975_v51, %v186_v52 }
 0x132   :  { %v192_v55 = vpack.c.bf16 %v1310_v54, %v1308_v53 }
 0x134   :  { %868 = vmatmul.msk.bf16.vlgmr.msra.gmra.mxu0 %vm130_vm0, %v192_v55  ;;  %877 = vmatmul.msk.bf16.vlgmr.msra.gmra.mxu1 %vm130_vm0, %v192_v55 }
 0x135   :  { %886 = vmatmul.msk.bf16.vlgmr.msra.gmra.mxu2 %vm130_vm0, %v192_v55 }
 0x1b1   :  { %v225_v56 = vpop.f32.mrf.mxu0  ;;  %v259_v57 = vpop.f32.mrf.mxu1 }
 0x1b2   :  { %v260_v59 = vadd.f32 %v977_v58, %v259_v57  ;;  %v226_v6 = vadd.f32 %v976_v0, %v225_v56 }
 0x1b4   :  { %v300_v1 = vpack.c.bf16 %v260_v59, %v260_v59  ;;  %v298_v15 = vpack.c.bf16 %v226_v6, %v226_v6 }
 0x1b6   :  { %v311_v7 = vunpack.c.l.b16 %v300_v1  ;;  %v306_v21 = vunpack.c.l.b16 %v298_v15 }
 0x1b8   :  { %v293_v60 = vpop.f32.mrf.mxu2 }
 0x1b9   :  { %v227_v62 = vpop.f32.mrf.mxu0  ;;  %v261_v63 = vpop.f32.mrf.mxu1  ;;  %v294_v5 = vadd.f32 %v978_v61, %v293_v60 }
 0x1ba   :  { %v262_v2 = vadd.f32 %v977_v58, %v261_v63  ;;  %v228_v3 = vadd.f32 %v976_v0, %v227_v62 }
 0x1bb   :  { %v302_v13 = vpack.c.bf16 %v294_v5, %v294_v5 }
 0x1bc   :  { %v301_v4 = vpack.c.bf16 %v262_v2, %v262_v2  ;;  %v299_v9 = vpack.c.bf16 %v228_v3, %v228_v3 }
 0x1bd   :  { %v365_v19 = vunpack.c.l.b16 %v302_v13 }
 0x1be   :  { %v312_v8 = vunpack.c.l.b16 %v301_v4  ;;  %v307_v18 = vunpack.c.l.b16 %v299_v9 }
 0x1c0   :  { %v313_v11 = vpack.c.b16 %v312_v8, %v311_v7  ;;  %v295_v12 = vpop.f32.mrf.mxu2  ;;  %v308_v23 = vpack.c.b16 %v307_v18, %v306_v21 }
 0x1c1   :  { %v296_v14 = vadd.f32 %v978_v61, %v295_v12 }
 0x1c2   :  { %530 = vrot.lane.b32.xlu1 %v313_v11, %s1165_s7  ;;  %459 = vrot.lane.b32.xlu0 %v313_v11, %s1166_s9  ;;  %v319_v16 = vsel %vm314_vm8, %v313_v11, 0 }
 0x1c3   :  { %v303_v17 = vpack.c.bf16 %v296_v14, %v296_v14  ;;  %388 = vrot.lane.b32.xlu2 %v313_v11, %s1167_s5  ;;  %328 = vmatpush.bf16.xpose.msra.mxu3 %v319_v16 }
 0x1c5   :  { %v366_v20 = vunpack.c.l.b16 %v303_v17 }
 0x1c7   :  { %v1330_v22 = vpack.c.b16 %v366_v20, %v365_v19 }
 0x1c9   :  { %379 = vmatpush.bf16.msrb.mxu0 %v1330_v22 }
 0x1ca   :  { %887 = vmatmul.msk.bf16.vlgmr.msra.gmra.mxu3 %vm314_vm8, %v308_v23 }
 0x1cb   :  { %386 = vrot.lane.b32.xlu2 %v308_v23, %s1167_s5 }
 0x1d3   :  { %457 = vrot.lane.b32.xlu2 %v308_v23, %s1166_s9 }
 0x1db   :  { %528 = vrot.lane.b32.xlu2 %v308_v23, %s1165_s7 }
 0x21d   :  { %v389_v24 = vpop.permute.xlu2 %388 }
 0x21e   :  { %v394_v25 = vsel %vm314_vm8, %v389_v24, 0 }
 0x21f   :  { %403 = vmatpush.bf16.xpose.msrb.mxu1 %v394_v25 }
 0x225   :  { %v387_v26 = vpop.permute.xlu2 %386 }
 0x226   :  { %889 = vmatmul.msk.bf16.vlgmr.msrb.gmra.mxu1 %vm314_vm8, %v387_v26 }
 0x22d   :  { %v458_v27 = vpop.permute.xlu2 %457 }
 0x234   :  { %v531_v28 = vpop.permute.xlu1 %530  ;;  %v460_v29 = vpop.permute.xlu0 %459 }
 0x235   :  { %v536_v30 = vsel %vm314_vm8, %v531_v28, 0  ;;  %v465_v31 = vsel %vm314_vm8, %v460_v29, 0  ;;  %v529_v32 = vpop.permute.xlu2 %528 }
 0x236   :  { %474 = vmatpush.bf16.xpose.msrb.mxu3 %v465_v31  ;;  %545 = vmatpush.bf16.xpose.msra.mxu1 %v536_v30 }
 0x23d   :  { %891 = vmatmul.msk.bf16.vlgmr.msrb.gmra.mxu3 %vm314_vm8, %v458_v27  ;;  %893 = vmatmul.msk.bf16.vlgmr.msra.gmra.mxu1 %vm314_vm8, %v529_v32 }
 0x24d   :  { %v330_v33 = vpop.f32.mrf.mxu3 }
 0x24e   :  { %v335_v35 = vmul.f32 0.35355338, %v330_v33 }
 0x250   :  { %v337_v36 = vadd.f32 %v335_v35, %v126_v34 }
 0x252   :  { %v340_v37 = vsel %vm339_vm9, %v337_v36, -inf }
 0x253   :  { %341 = vmax.xlane.f32.xlu1 %v340_v37 }
 0x255   :  { %v332_v40 = vpop.f32.mrf.mxu3 }
 0x256   :  { %v336_v42 = vmul.f32 0.35355338, %v332_v40 }
 0x258   :  { %v338_v47 = vadd.f32 %v336_v42, %v127_v44 }
 0x25a   :  { %v343_v50 = vsel %vm339_vm9, %v338_v47, -inf }
 0x2a3   :  { %v405_v38 = vpop.f32.mrf.mxu1 }
 0x2a4   :  { %v410_v39 = vmul.f32 0.35355338, %v405_v38 }
 0x2a6   :  { %v412_v41 = vadd.f32 %v410_v39, %v126_v34 }
 0x2a8   :  { %v414_v43 = vsel %vm339_vm9, %v412_v41, -inf }
 0x2a9   :  { %415 = vmax.xlane.f32.xlu2 %v414_v43 }
 0x2ab   :  { %v407_v45 = vpop.f32.mrf.mxu1 }
 0x2ac   :  { %v411_v46 = vmul.f32 0.35355338, %v407_v45 }
 0x2ae   :  { %v413_v48 = vadd.f32 %v411_v46, %v127_v44 }
 0x2b0   :  { %v417_v49 = vsel %vm339_vm9, %v413_v48, -inf }
 0x2b1   :  { %418 = vmax.xlane.f32.xlu0 %v417_v49  ;;  %344 = vmax.xlane.f32.xlu2 %v343_v50 }
 0x2ba   :  { %v547_v51 = vpop.f32.mrf.mxu1 }
 0x2bb   :  { %v552_v3 = vmul.f32 0.35355338, %v547_v51 }
 0x2bd   :  { %v554_v6 = vadd.f32 %v552_v3, %v126_v34 }
 0x2bf   :  { %v556_v7 = vsel %vm339_vm9, %v554_v6, -inf }
 0x2c0   :  { %v476_v52 = vpop.f32.mrf.mxu3 }
 0x2c1   :  { %v481_v55 = vmul.f32 0.35355338, %v476_v52 }
 0x2c2   :  { %v549_v56 = vpop.f32.mrf.mxu1 }
 0x2c3   :  { %v553_v57 = vmul.f32 0.35355338, %v549_v56  ;;  %v483_v58 = vadd.f32 %v481_v55, %v126_v34 }
 0x2c5   :  { %v485_v59 = vsel %vm339_vm9, %v483_v58, -inf  ;;  %v555_v60 = vadd.f32 %v553_v57, %v127_v44 }
 0x2c6   :  { %486 = vmax.xlane.f32.xlu1 %v485_v59  ;;  %v342_v63 = vpop.xlane.xlu1 %341 }
 0x2c7   :  { %v559_v61 = vsel %vm339_vm9, %v555_v60, -inf  ;;  %v346_v2 = vsub.f32 %v337_v36, %v342_v63 }
 0x2c8   :  { %v478_v62 = vpop.f32.mrf.mxu3  ;;  %560 = vmax.xlane.f32.xlu2 %v559_v61 }
 0x2c9   :  { %v482_v0 = vmul.f32 0.35355338, %v478_v62  ;;  %v348_v5 = vmul.f32 1.442695, %v346_v2 }
 0x2cb   :  { %v484_v1 = vadd.f32 %v482_v0, %v127_v44  ;;  %990 = vpow2.f32 %v348_v5 }
 0x2cd   :  { %v488_v4 = vsel %vm339_vm9, %v484_v1, -inf }
 0x2ce   :  { %489 = vmax.xlane.f32.xlu0 %v488_v4 }
 0x2d1   :  { %v991_v8 = vpop.eup %990 }
 0x2d2   :  { %v352_v9 = vsel %vm339_vm9, %v991_v8, 0.0 }
 0x2d6   :  { %557 = vmax.xlane.f32.xlu0 %v556_v7 }
 0x2de   :  { %353 = vadd.xlane.f32.xlu0 %v352_v9 }
 0x31c   :  { %v416_v11 = vpop.xlane.xlu2 %415 }
 0x31d   :  { %v420_v18 = vsub.f32 %v412_v41, %v416_v11 }
 0x31f   :  { %v422_v19 = vmul.f32 1.442695, %v420_v18 }
 0x324   :  { %v419_v12 = vpop.xlane.xlu0 %418  ;;  %v345_v13 = vpop.xlane.xlu2 %344 }
 0x325   :  { %v421_v14 = vsub.f32 %v413_v48, %v419_v12  ;;  %v347_v15 = vsub.f32 %v338_v47, %v345_v13 }
 0x327   :  { %v424_v16 = vmul.f32 1.442695, %v421_v14  ;;  %v350_v17 = vmul.f32 1.442695, %v347_v15 }
 0x329   :  { %992 = vpow2.f32 %v424_v16 }
 0x32a   :  { %994 = vpow2.f32 %v350_v17 }
 0x32b   :  { %996 = vpow2.f32 %v422_v19 }
 0x32f   :  { %v993_v20 = vpop.eup %992 }
 0x330   :  { %v995_v21 = vpop.eup %994  ;;  %v429_v23 = vsel %vm339_vm9, %v993_v20, 0.0 }
 0x331   :  { %430 = vadd.xlane.f32.xlu1 %v429_v23  ;;  %v355_v24 = vsel %vm339_vm9, %v995_v21, 0.0  ;;  %v997_v25 = vpop.eup %996 }
 0x332   :  { %356 = vadd.xlane.f32.xlu2 %v355_v24  ;;  %v426_v26 = vsel %vm339_vm9, %v997_v25, 0.0 }
 0x339   :  { %v487_v27 = vpop.xlane.xlu1 %486 }
 0x33a   :  { %427 = vadd.xlane.f32.xlu2 %v426_v26  ;;  %v491_v28 = vsub.f32 %v483_v58, %v487_v27 }
 0x33b   :  { %v561_v30 = vpop.xlane.xlu2 %560 }
 0x33c   :  { %v493_v29 = vmul.f32 1.442695, %v491_v28  ;;  %v563_v34 = vsub.f32 %v555_v60, %v561_v30  ;;  %v937_v28 = vld [vmem:[#allocation7 + $0x8] sm:$0xff] }
 0x33d   :  { %660 = vmatpush.bf16.msra.mxu3 %v937_v28 }
 0x33e   :  { %998 = vpow2.f32 %v493_v29  ;;  %v566_v37 = vmul.f32 1.442695, %v563_v34  ;;  %v936_v29 = vld [vmem:[#allocation7] sm:$0xff] }
 0x341   :  { %v490_v31 = vpop.xlane.xlu0 %489  ;;  %661 = vmatpush.bf16.msra.mxu3 %v936_v29 }
 0x342   :  { %v492_v32 = vsub.f32 %v484_v1, %v490_v31 }
 0x344   :  { %v999_v33 = vpop.eup %998  ;;  %v495_v35 = vmul.f32 1.442695, %v492_v32 }
 0x345   :  { %v497_v36 = vsel %vm339_vm9, %v999_v33, 0.0 }
 0x346   :  { %1000 = vpow2.f32 %v495_v35  ;;  %498 = vadd.xlane.f32.xlu0 %v497_v36 }
 0x347   :  { %1002 = vpow2.f32 %v566_v37 }
 0x349   :  { %v558_v38 = vpop.xlane.xlu0 %557 }
 0x34a   :  { %437 = vrot.lane.b32.xlu1 %v1330_v22, %s1167_s5  ;;  %v562_v39 = vsub.f32 %v554_v6, %v558_v38  ;;  %s845_s5 = sshll.u32 %s1443_s18, 4  ;;  %s846_s5 = int_to_ptr.hbm [resolvable:$true] %s845_s5 }
 0x34c   :  { %v1001_v40 = vpop.eup %1000  ;;  %v564_v41 = vmul.f32 1.442695, %v562_v39 }
 0x34d   :  { %v500_v42 = vsel %vm339_vm9, %v1001_v40, 0.0  ;;  %v1003_v43 = vpop.eup %1002 }
 0x34e   :  { %1004 = vpow2.f32 %v564_v41  ;;  %501 = vadd.xlane.f32.xlu2 %v500_v42  ;;  %v571_v46 = vsel %vm339_vm9, %v1003_v43, 0.0 }
 0x351   :  { %v354_v47 = vpop.xlane.xlu0 %353 }
 0x352   :  { %1006 = vrcp.f32 %v354_v47 }
 0x354   :  { %v1005_v44 = vpop.eup %1004 }
 0x355   :  { %v568_v45 = vsel %vm339_vm9, %v1005_v44, 0.0 }
 0x356   :  { %569 = vadd.xlane.f32.xlu0 %v568_v45  ;;  %572 = vadd.xlane.f32.xlu2 %v571_v46  ;;  %v979_v46 = vld [vmem:[%s1436_s11] ss:$0 sm:$0xff] }
 0x358   :  { %v1007_v49 = vpop.eup %1006 }
 0x359   :  { %v360_v51 = vmul.f32 %v1007_v49, %v991_v8 }
 0x36a   :  { %579 = vrot.lane.b32.xlu0 %v1330_v22, %s1165_s7 }
 0x36e   :  { %508 = vrot.lane.b32.xlu2 %v1330_v22, %s1166_s9 }
 0x3a4   :  { %v431_v57 = vpop.xlane.xlu1 %430 }
 0x3a5   :  { %v357_v48 = vpop.xlane.xlu2 %356 }
 0x3a6   :  { %1008 = vrcp.f32 %v357_v48 }
 0x3ac   :  { %v1009_v50 = vpop.eup %1008 }
 0x3ad   :  { %v361_v52 = vmul.f32 %v1009_v50, %v995_v21  ;;  %v428_v55 = vpop.xlane.xlu2 %427 }
 0x3ae   :  { %1010 = vrcp.f32 %v428_v55 }
 0x3af   :  { %v362_v56 = vpack.c.bf16 %v361_v52, %v360_v51  ;;  %1012 = vrcp.f32 %v431_v57 }
 0x3b1   :  { %888 = vmatmul.msk.bf16.vlgmr.msrb.gmra.mxu0 %vm339_vm9, %v362_v56 }
 0x3b4   :  { %v1011_v58 = vpop.eup %1010 }
 0x3b5   :  { %v1013_v59 = vpop.eup %1012  ;;  %v434_v60 = vmul.f32 %v1011_v58, %v997_v25 }
 0x3b6   :  { %v435_v61 = vmul.f32 %v1013_v59, %v993_v20 }
 0x3b8   :  { %v436_v62 = vpack.c.bf16 %v435_v61, %v434_v60 }
 0x3b9   :  { %v499_v0 = vpop.xlane.xlu0 %498 }
 0x3bc   :  { %v438_v22 = vpop.permute.xlu1 %437 }
 0x3bd   :  { %450 = vmatpush.bf16.msrb.mxu2 %v438_v22 }
 0x3c0   :  { %890 = vmatmul.msk.bf16.vlgmr.msrb.gmra.mxu2 %vm339_vm9, %v436_v62 }
 0x3c1   :  { %v502_v63 = vpop.xlane.xlu2 %501 }
 0x3c2   :  { %1014 = vrcp.f32 %v502_v63 }
 0x3c3   :  { %1016 = vrcp.f32 %v499_v0 }
 0x3c8   :  { %v1015_v2 = vpop.eup %1014 }
 0x3c9   :  { %v573_v1 = vpop.xlane.xlu2 %572  ;;  %v570_v3 = vpop.xlane.xlu0 %569  ;;  %v506_v5 = vmul.f32 %v1015_v2, %v1001_v40 }
 0x3ca   :  { %v1017_v4 = vpop.eup %1016  ;;  %1018 = vrcp.f32 %v570_v3 }
 0x3cb   :  { %v505_v6 = vmul.f32 %v1017_v4, %v999_v33  ;;  %1020 = vrcp.f32 %v573_v1  ;;  %v939_v1 = vld [vmem:[#allocation8 + $0x8] sm:$0xff]  ;;  %v938_v4 = vld [vmem:[#allocation8] sm:$0xff] }
 0x3cd   :  { %v507_v8 = vpack.c.bf16 %v506_v5, %v505_v6 }
 0x3d0   :  { %v1019_v9 = vpop.eup %1018 }
 0x3d1   :  { %v509_v7 = vpop.permute.xlu2 %508  ;;  %v1021_v11 = vpop.eup %1020  ;;  %v576_v12 = vmul.f32 %v1019_v9, %v1005_v44 }
 0x3d2   :  { %521 = vmatpush.bf16.msra.mxu0 %v509_v7  ;;  %v577_v13 = vmul.f32 %v1021_v11, %v1003_v43 }
 0x3d4   :  { %v578_v15 = vpack.c.bf16 %v577_v13, %v576_v12 }
 0x3d5   :  { %892 = vmatmul.msk.bf16.vlgmr.msra.gmra.mxu0 %vm339_vm9, %v507_v8 }
 0x3d6   :  { %756 = vmatpush.bf16.msrb.mxu0 %v939_v1 }
 0x3da   :  { %757 = vmatpush.bf16.msrb.mxu0 %v938_v4 }
 0x3dc   :  { %v580_v14 = vpop.permute.xlu0 %579 }
 0x3dd   :  { %592 = vmatpush.bf16.msra.mxu2 %v580_v14 }
 0x3e0   :  { %894 = vmatmul.msk.bf16.vlgmr.msra.gmra.mxu2 %vm339_vm9, %v578_v15 }
 0x42e   :  { %v381_v16 = vpop.f32.mrf.mxu0 }
 0x436   :  { %v383_v18 = vpop.f32.mrf.mxu0 }
 0x443   :  { %v452_v17 = vpop.f32.mrf.mxu2 }
 0x44b   :  { %v454_v19 = vpop.f32.mrf.mxu2 }
 0x44c   :  { %v959_v20 = vpack.i.bf16 %v454_v19, %v452_v17 }
 0x44e   :  { %960 = vrot.lane.b32.xlu1 %v959_v20, %s1168_s20 }
 0x452   :  { %v523_v21 = vpop.f32.mrf.mxu0 }
 0x45a   :  { %v525_v23 = vpop.f32.mrf.mxu0 }
 0x45b   :  { %v964_v24 = vpack.i.bf16 %v525_v23, %v523_v21 }
 0x45d   :  { %965 = vrot.lane.b32.xlu1 %v964_v24, %s1169_s21 }
 0x463   :  { %v594_v25 = vpop.f32.mrf.mxu2 }
 0x46b   :  { %v596_v26 = vpop.f32.mrf.mxu2 }
 0x46c   :  { %v969_v27 = vpack.i.bf16 %v596_v26, %v594_v25  ;;  %v981_v25 = vld [vmem:[%s1438_s13] ss:$0 sm:$0xff] }
 0x46e   :  { %970 = vrot.lane.b32.xlu0 %v969_v27, %s1170_s22 }
 0x4c0   :  { %v961_v30 = vpop.permute.xlu1 %960 }
 0x4c1   :  { %v963_v32 = vunpack.i.h.bf16 %v961_v30  ;;  %v962_v33 = vunpack.i.l.bf16 %v961_v30 }
 0x4c3   :  { %v624_v37 = vsel %vm314_vm8, %v383_v18, %v963_v32  ;;  %v623_v38 = vsel %vm314_vm8, %v381_v16, %v962_v33  ;;  %v943_v32 = vld [vmem:[%s1441_s16 + $0x18] sm:$0xff]  ;;  %v942_v33 = vld [vmem:[%s1441_s16 + $0x10] sm:$0xff] }
 0x4c4   :  { %827 = vmatpush.bf16.msrb.mxu1 %v943_v32 }
 0x4c8   :  { %828 = vmatpush.bf16.msrb.mxu1 %v942_v33 }
 0x4cf   :  { %v966_v31 = vpop.permute.xlu1 %965 }
 0x4d0   :  { %v968_v34 = vunpack.i.h.bf16 %v966_v31  ;;  %v967_v35 = vunpack.i.l.bf16 %v966_v31 }
 0x4d2   :  { %v626_v41 = vsel %vm339_vm9, %v624_v37, %v968_v34  ;;  %v625_v42 = vsel %vm339_vm9, %v623_v38, %v967_v35  ;;  %v941_v34 = vld [vmem:[%s1441_s16 + $0x8] sm:$0xff]  ;;  %v982_v35 = vld [vmem:[%s1440_s15] ss:$0 sm:$0xff] }
 0x4d3   :  { %829 = vmatpush.bf16.msrb.mxu1 %v941_v34 }
 0x4e0   :  { %v971_v36 = vpop.permute.xlu0 %970 }
 0x4e1   :  { %v973_v39 = vunpack.i.h.bf16 %v971_v36  ;;  %v972_v40 = vunpack.i.l.bf16 %v971_v36  ;;  %v940_v36 = vld [vmem:[%s1441_s16] sm:$0xff] }
 0x4e2   :  { %830 = vmatpush.bf16.msrb.mxu1 %v940_v36 }
 0x4e3   :  { %v628_v43 = vsel %vm627_vm10, %v625_v42, %v972_v40  ;;  %v629_v44 = vsel %vm627_vm10, %v626_v41, %v973_v39 }
 0x4e4   :  { %v630_v45 = vpack.c.bf16 %v629_v44, %v628_v43 }
 0x4e6   :  { %903 = vmatmul.msk.bf16.vlgmr.msra.gmra.mxu3 %vm130_vm0, %v630_v45 }
 0x569   :  { %v663_v47 = vpop.f32.mrf.mxu3 }
 0x56a   :  { %v664_v48 = vadd.f32 %v979_v46, %v663_v47 }
 0x56c   :  { %v668_v49 = vadd.f32 %v664_v48, %v1308_v53 }
 0x56e   :  { %v672_v50 = vsel %vm130_vm0, %v668_v49, 0.0 }
 0x56f   :  { %673 = vadd.xlane.f32.xlu1 %v672_v50 }
 0x571   :  { %v665_v51 = vpop.f32.mrf.mxu3 }
 0x572   :  { %v666_v52 = vadd.f32 %v979_v46, %v665_v51 }
 0x574   :  { %v669_v55 = vadd.f32 %v666_v52, %v1310_v54 }
 0x576   :  { %v675_v56 = vsel %vm130_vm0, %v669_v55, 0.0 }
 0x577   :  { %676 = vadd.xlane.f32.xlu2 %v675_v56 }
 0x5e2   :  { %v674_v57 = vpop.xlane.xlu1 %673 }
 0x5e3   :  { %v678_v58 = vmul.f32 %v674_v57, %v1288_v10 }
 0x5e5   :  { %v680_v59 = vsub.f32 %v668_v49, %v678_v58 }
 0x5e7   :  { %v682_v60 = vmul.f32 %v680_v59, %v680_v59 }
 0x5e9   :  { %v684_v61 = vsel %vm130_vm0, %v682_v60, 0.0 }
 0x5ea   :  { %v677_v22 = vpop.xlane.xlu2 %676  ;;  %685 = vadd.xlane.f32.xlu0 %v684_v61 }
 0x5eb   :  { %v679_v53 = vmul.f32 %v677_v22, %v1288_v10  ;;  %v983_v22 = vld [vmem:[%s1442_s17] ss:$0 sm:$0xff] }
 0x5ed   :  { %v681_v62 = vsub.f32 %v669_v55, %v679_v53 }
 0x5ef   :  { %v683_v63 = vmul.f32 %v681_v62, %v681_v62 }
 0x5f1   :  { %v687_v0 = vsel %vm130_vm0, %v683_v63, 0.0 }
 0x5f2   :  { %688 = vadd.xlane.f32.xlu1 %v687_v0 }
 0x65d   :  { %v686_v54 = vpop.xlane.xlu0 %685 }
 0x65e   :  { %v690_v2 = vmul.f32 %v686_v54, %v1288_v10 }
 0x660   :  { %v692_v3 = vadd.f32 1e-05, %v690_v2 }
 0x662   :  { %1022 = vrsqrt.f32 %v692_v3  ;;  %vm700_vm12 = vweird.f32 %v692_v3 }
 0x665   :  { %v689_v5 = vpop.xlane.xlu1 %688 }
 0x666   :  { %v691_v6 = vmul.f32 %v689_v5, %v1288_v10  ;;  %v980_v10 = vld [vmem:[%s1437_s12] ss:$0 sm:$0xff] }
 0x668   :  { %v1023_v7 = vpop.eup %1022  ;;  %v693_v8 = vadd.f32 1e-05, %v691_v6 }
 0x669   :  { %v695_v9 = vmul.f32 %v1023_v7, %v692_v3  ;;  %vm701_vm11 = vweird.f32 %v1023_v7 }
 0x66a   :  { %1024 = vrsqrt.f32 %v693_v8  ;;  %vm702_vm13 = vmor %vm700_vm12, %vm701_vm11  ;;  %vm710_vm15 = vweird.f32 %v693_v8 }
 0x66b   :  { %v696_v11 = vmul.f32 %v1023_v7, %v695_v9 }
 0x66d   :  { %v697_v12 = vmul.f32 0.5, %v696_v11 }
 0x66f   :  { %v698_v13 = vsub.f32 1.5, %v697_v12 }
 0x670   :  { %v1025_v14 = vpop.eup %1024 }
 0x671   :  { %v699_v15 = vmul.f32 %v1023_v7, %v698_v13  ;;  %v705_v16 = vmul.f32 %v1025_v14, %v693_v8  ;;  %vm711_vm14 = vweird.f32 %v1025_v14 }
 0x672   :  { %vm712_vm1 = vmor %vm710_vm15, %vm711_vm14 }
 0x673   :  { %v706_v17 = vmul.f32 %v1025_v14, %v705_v16  ;;  %v703_v18 = vsel %vm702_vm13, %v1023_v7, %v699_v15 }
 0x674   :  { %v714_v21 = vmul.f32 %v703_v18, %v680_v59 }
 0x675   :  { %v707_v19 = vmul.f32 0.5, %v706_v17 }
 0x676   :  { %v719_v26 = vmul.f32 %v980_v10, %v714_v21 }
 0x677   :  { %v708_v20 = vsub.f32 1.5, %v707_v19 }
 0x678   :  { %v724_v29 = vadd.f32 %v981_v25, %v719_v26 }
 0x679   :  { %v709_v23 = vmul.f32 %v1025_v14, %v708_v20 }
 0x67b   :  { %v713_v24 = vsel %vm712_vm1, %v1025_v14, %v709_v23 }
 0x67c   :  { %v715_v27 = vmul.f32 %v713_v24, %v681_v62 }
 0x67e   :  { %v720_v28 = vmul.f32 %v980_v10, %v715_v27 }
 0x680   :  { %v725_v30 = vadd.f32 %v981_v25, %v720_v28 }
 0x682   :  { %v726_v31 = vpack.c.bf16 %v725_v30, %v724_v29 }
 0x684   :  { %912 = vmatmul.msk.bf16.vlgmr.msrb.gmra.mxu0 %vm130_vm0, %v726_v31 }
 0x701   :  { %v759_v37 = vpop.f32.mrf.mxu0 }
 0x702   :  { %v760_v38 = vadd.f32 %v982_v35, %v759_v37 }
 0x704   :  { %v766_v39 = vmul.f32 0.044715, %v760_v38  ;;  %v764_v56 = vmul.f32 0.5, %v760_v38 }
 0x706   :  { %v768_v40 = vmul.f32 %v766_v39, %v760_v38 }
 0x708   :  { %v770_v41 = vmul.f32 %v768_v40, %v760_v38 }
 0x709   :  { %v761_v42 = vpop.f32.mrf.mxu0 }
 0x70a   :  { %v772_v43 = vadd.f32 %v770_v41, %v760_v38  ;;  %v762_v44 = vadd.f32 %v982_v35, %v761_v42 }
 0x70c   :  { %v767_v45 = vmul.f32 0.044715, %v762_v44  ;;  %v774_v46 = vmul.f32 0.7978846, %v772_v43  ;;  %v765_v57 = vmul.f32 0.5, %v762_v44 }
 0x70e   :  { %v769_v47 = vmul.f32 %v767_v45, %v762_v44  ;;  %1026 = vtanh.f32 %v774_v46 }
 0x710   :  { %v771_v48 = vmul.f32 %v769_v47, %v762_v44 }
 0x712   :  { %v773_v49 = vadd.f32 %v771_v48, %v762_v44 }
 0x714   :  { %v775_v50 = vmul.f32 0.7978846, %v773_v49  ;;  %v1027_v51 = vpop.eup %1026 }
 0x715   :  { %v778_v52 = vadd.f32 1.0, %v1027_v51 }
 0x716   :  { %1028 = vtanh.f32 %v775_v50 }
 0x717   :  { %v780_v59 = vmul.f32 %v778_v52, %v764_v56 }
 0x71c   :  { %v1029_v55 = vpop.eup %1028 }
 0x71d   :  { %v779_v58 = vadd.f32 1.0, %v1029_v55 }
 0x71f   :  { %v781_v60 = vmul.f32 %v779_v58, %v765_v57 }
 0x721   :  { %v782_v61 = vpack.c.bf16 %v781_v60, %v780_v59 }
 0x723   :  { %929 = vmatmul.msk.bf16.vlgmr.msrb.gmra.mxu1 %vm819_vm2, %v782_v61 }
 0x7a0   :  { %v832_v53 = vpop.f32.mrf.mxu1 }
 0x7a1   :  { %v833_v62 = vadd.f32 %v983_v22, %v832_v53 }
 0x7a3   :  { %837 = vst.msk [vmem:[#allocation10] sm:$0xff] %vm130_vm0, %v833_v62 }
 0x7a8   :  { %v834_v63 = vpop.f32.mrf.mxu1 }
 0x7a9   :  { %v835_v0 = vadd.f32 %v983_v22, %v834_v63 }
 0x7ab   :  { %838 = vst.msk [vmem:[#allocation10 + $0x8] sm:$0xff] %vm130_vm0, %v835_v0 }
 0x7ac   :  { %851 = dma.vmem_to_hbm [thread:$0]  %s844_s10, 256, %s846_s5, [#allocation4], %s1172_s0, %s1172_s0, %s1168_s20  }
 0x7ad   :  { %1156 = dma.done.wait [#allocation4], 256  }
 0x7ae   :  { %1157 = vsyncadd [#allocation4], 4294967040 }
 0x7af   :  { %856 = vsyncpa [#allocation3], 1 }
 0x7b0   :  { %857 = vsyncpa [#allocation6], 1 }
 0x7b1   :  { %858 = vsyncpa [#allocation9], 1 }
 0x7b2   :  { %859 = vsyncpa [#allocation4], 1 }

</bundles_post_ra>
